<compile_context>
chip_gen: v7x
topology: tpu7x:2x2x1
jax: 0.10.0
libtpu: 0.0.40
codegen_flags: <defaults>
</compile_context>

<pallas_src>
import jax
import jax.numpy as jnp
from jax import lax
from jax.experimental import pallas as pl
from jax.experimental.pallas import tpu as pltpu


def _round_up(x, m):
    return ((x + m - 1) // m) * m


def _proj_kernel(x_ref, w_ref, b_ref, o_ref):
    # x_ref: (TM, C) tile of flattened (B*H*W) rows, channel-last (bf16; f32
    #        inputs are cast to bf16 in-register, hidden under the DMA)
    # w_ref: (D, C)  bf16 1x1-conv weight (contract over C; no wrapper transpose)
    # b_ref: (1, D)  f32 bias (resident, lane-broadcast row)
    # o_ref: (TM, D) output tile; once unflattened this is already 'B (H W) D'
    x = x_ref[...].astype(jnp.bfloat16)
    y = lax.dot_general(
        x, w_ref[...],
        dimension_numbers=(((1,), (1,)), ((), ())),      # x @ w.T on the MXU
        preferred_element_type=jnp.float32,
    )
    o_ref[...] = (y + b_ref[...]).astype(o_ref.dtype)


def encoder_image_proj(x_flat, w, b, *, tm=2048, out_dtype=jnp.bfloat16):
    """1x1 conv + rearrange as one flattened, M-tiled matmul (memory-bound GEMM).

    x_flat: (B, HW, C) channel-last backbone features (bf16 preferred; f32 is
            cast to bf16 in-register inside the kernel)
    w:      (D, C)     nn.Conv2d(embed_dim, embed_dim, 1) weight squeezed
    b:      (D,)       conv bias
    returns (B, HW, D) == rearrange(proj(feats), 'B D H W -> B (H W) D')
    """
    B, HW, C = x_flat.shape
    D = w.shape[0]
    M = B * HW

    # Tile selection: as big as possible (per-step overhead dominates a
    # memory-bound GEMM), shrunk to a 16-row-aligned tile for tiny inputs
    # (bf16 sublane packing), then capped so the grid has >= 2 steps and the
    # "parallel" M axis can actually shard across both TensorCores on v7x.
    tm = min(tm, _round_up(M, 16))
    if M > 16 and pl.cdiv(M, tm) < 2:
        tm = _round_up(pl.cdiv(M, 2), 16)

    x2d = x_flat.reshape(M, C)                 # free reshape (channel-last); no pad / slice passes
    w_bf = w.astype(jnp.bfloat16)              # tiny one-time cast; weight stays resident in VMEM
    b2 = b.reshape(1, D).astype(jnp.float32)   # bias add stays f32 in-kernel

    out = pl.pallas_call(
        _proj_kernel,
        out_shape=jax.ShapeDtypeStruct((M, D), out_dtype),
        grid_spec=pltpu.PrefetchScalarGridSpec(
            num_scalar_prefetch=0,
            grid=(pl.cdiv(M, tm),),                       # ragged last block masked by Pallas
            in_specs=[
                pl.BlockSpec((tm, C), lambda i: (i, 0)),
                pl.BlockSpec((D, C), lambda i: (0, 0)),   # constant index: weight resident across M tiles
                pl.BlockSpec((1, D), lambda i: (0, 0)),   # constant index: bias resident across M tiles
            ],
            out_specs=pl.BlockSpec((tm, D), lambda i: (i, 0)),
        ),
        compiler_params=pltpu.CompilerParams(
            dimension_semantics=("parallel",),            # >=2 M tiles -> both TCs on v7x
        ),
    )(x2d, w_bf, b2)

    return out.reshape(B, HW, D)


def standin_cnn_nhwc(images, w_lift, *, dtype=jnp.bfloat16):
    """Deterministic stand-in for the pretrained torchvision backbone.
    images: (B, 3, 28, 28) NCHW -> channel-last features (B, 7, 7, cnn_dim),
    emitted directly in the kernel's feed dtype (bf16 cast fused into the
    producing einsum -> single bf16 HBM write, no separate convert pass)."""
    B, Cin, H, W = images.shape
    # adaptive average pool to 7x7 (4x4 windows)
    pooled = images.reshape(B, Cin, 7, H // 7, 7, W // 7).mean(axis=(3, 5))   # (B, 3, 7, 7)
    # fixed channel lift 3 -> cnn_dim, channel-last (no NCHW->NHWC relayout later)
    feats = jnp.einsum("dc,bchw->bhwd", w_lift, pooled)                        # (B, 7, 7, cnn_dim)
    return feats.astype(dtype)


def encoder_image_forward(images, params, *, out_dtype=jnp.bfloat16):
    """Full EncoderImage.forward (with stand-in backbone)."""
    # TODO(synk): optionally fold the stand-in channel lift into proj_w to skip
    # the feature intermediate entirely -- only valid while the backbone is linear.
    feats = standin_cnn_nhwc(images, params["w_lift"])                         # (B, 7, 7, C) bf16
    B, H, W, C = feats.shape
    x_flat = feats.reshape(B, H * W, C)                                        # free reshape
    return encoder_image_proj(x_flat, params["proj_w"], params["proj_b"],
                              out_dtype=out_dtype)                             # (B, 49, embed_dim)


if __name__ == "__main__":
    # Small, deterministic config: embed_dim == cnn_dim (required by the module's forward).
    B, Cin, Himg, Wimg = 2, 3, 28, 28
    cnn_dim = 128
    embed_dim = 128

    key = jax.random.PRNGKey(0)
    k_img, k_lift, k_w, k_b = jax.random.split(key, 4)

    images = jax.random.normal(k_img, (B, Cin, Himg, Wimg), dtype=jnp.float32)
    params = {
        "w_lift": jax.random.normal(k_lift, (cnn_dim, Cin), dtype=jnp.float32) * 0.1,
        # nn.Conv2d(embed_dim, embed_dim, 1) weight (D_out, C, 1, 1) -> (D_out, C)
        "proj_w": jax.random.normal(k_w, (embed_dim, cnn_dim), dtype=jnp.float32) * 0.05,
        "proj_b": jax.random.normal(k_b, (embed_dim,), dtype=jnp.float32) * 0.05,
    }

    out = jax.block_until_ready(encoder_image_forward(images, params))
    assert out.shape == (B, 49, embed_dim), out.shape
    out_f32 = out.astype(jnp.float32)

    # (1) Tight check vs matched-precision reference (same bf16 features/weight,
    #     f32 accumulate; tolerance covers the bf16 output rounding).
    feats_bf = standin_cnn_nhwc(images, params["w_lift"])                       # bf16, same producer as the kernel path
    x_bf = feats_bf.reshape(B, 49, cnn_dim).astype(jnp.float32)
    w_bf = params["proj_w"].astype(jnp.bfloat16).astype(jnp.float32)
    ref_bf = jnp.einsum("bnc,dc->bnd", x_bf, w_bf) + params["proj_b"][None, None, :]
    assert jnp.allclose(out_f32, ref_bf, atol=3e-3, rtol=3e-2), \
        float(jnp.max(jnp.abs(out_f32 - ref_bf)))

    # (2) Loose check vs the full-f32 module semantics (1x1 conv + rearrange).
    feats_f32 = standin_cnn_nhwc(images, params["w_lift"], dtype=jnp.float32)   # (B, 7, 7, C)
    feats_nchw = jnp.transpose(feats_f32, (0, 3, 1, 2))                         # (B, D, 7, 7)
    ref = jnp.einsum("oc,bchw->bohw", params["proj_w"], feats_nchw) \
        + params["proj_b"][None, :, None, None]
    ref = jnp.transpose(ref, (0, 2, 3, 1)).reshape(B, 49, embed_dim)            # 'B D H W -> B (H W) D'
    assert jnp.allclose(out_f32, ref, atol=1e-2, rtol=1e-2), \
        float(jnp.max(jnp.abs(out_f32 - ref)))

    print("KERNEL_OK")
</pallas_src>

<mosaic_0001>
module attributes {stable_mosaic.version = 11 : i64} {
  func.func @_proj_kernel(%arg0: i32, %arg1: memref<64x128xbf16, #tpu.memory_space<vmem>>, %arg2: memref<128x128xbf16, #tpu.memory_space<vmem>>, %arg3: memref<1x128xf32, #tpu.memory_space<vmem>>, %arg4: memref<64x128xbf16, #tpu.memory_space<vmem>>) attributes {dimension_semantics = [#tpu.dimension_semantics<parallel>], iteration_bounds = array<i64: 2>, scalar_prefetch = 0 : i64, scratch_operands = 0 : i64, tpu.core_type = #tpu.core_type<tc>, window_params = [{transform_indices = @transform_0, window_bounds = array<i64: 64, 128>}, {pipeline_mode = #tpu.pipeline_mode<synchronous>, transform_indices = @transform_1, window_bounds = array<i64: 128, 128>}, {pipeline_mode = #tpu.pipeline_mode<synchronous>, transform_indices = @transform_2, window_bounds = array<i64: 1, 128>}, {transform_indices = @transform_3, window_bounds = array<i64: 64, 128>}]} {
    %c0 = arith.constant 0 : index
    %c0_0 = arith.constant 0 : index
    %0 = vector.load %arg1[%c0, %c0_0] : memref<64x128xbf16, #tpu.memory_space<vmem>>, vector<64x128xbf16>
    %c0_1 = arith.constant 0 : index
    %c0_2 = arith.constant 0 : index
    %1 = vector.load %arg2[%c0_1, %c0_2] : memref<128x128xbf16, #tpu.memory_space<vmem>>, vector<128x128xbf16>
    %cst = arith.constant dense<0.000000e+00> : vector<64x128xf32>
    %2 = tpu.matmul %0, %1, %cst {dimension_numbers = #tpu.dot_dimension_numbers<[1], [1], [0], [0], [0, 0, 1, 0], [], []>} : vector<64x128xbf16>, vector<128x128xbf16>, vector<64x128xf32> -> vector<64x128xf32>
    %c0_3 = arith.constant 0 : index
    %c0_4 = arith.constant 0 : index
    %3 = vector.load %arg3[%c0_3, %c0_4] : memref<1x128xf32, #tpu.memory_space<vmem>>, vector<1x128xf32>
    %4 = vector.broadcast %3 : vector<1x128xf32> to vector<64x128xf32>
    %5 = arith.addf %2, %4 : vector<64x128xf32>
    %6 = arith.truncf %5 : vector<64x128xf32> to vector<64x128xbf16>
    %c0_5 = arith.constant 0 : index
    %c0_6 = arith.constant 0 : index
    %7 = vector.load %arg4[%c0_5, %c0_6] : memref<64x128xbf16, #tpu.memory_space<vmem>>, vector<64x128xbf16>
    tpu.vector_store %arg4[%c0_5, %c0_6], %6 {strides = array<i32>} : memref<64x128xbf16, #tpu.memory_space<vmem>>, vector<64x128xbf16>,
    return
  }
  func.func @transform_0(%arg0: i32) -> (i32, i32) {
    %c0_i32 = arith.constant 0 : i32
    %c0_i32_0 = arith.constant 0 : i32
    return %arg0, %c0_i32 : i32, i32
  }
  func.func @transform_1(%arg0: i32) -> (i32, i32) {
    %c0_i32 = arith.constant 0 : i32
    %c0_i32_0 = arith.constant 0 : i32
    %c0_i32_1 = arith.constant 0 : i32
    return %c0_i32, %c0_i32_0 : i32, i32
  }
  func.func @transform_2(%arg0: i32) -> (i32, i32) {
    %c0_i32 = arith.constant 0 : i32
    %c0_i32_0 = arith.constant 0 : i32
    %c0_i32_1 = arith.constant 0 : i32
    return %c0_i32, %c0_i32_0 : i32, i32
  }
  func.func @transform_3(%arg0: i32) -> (i32, i32) {
    %c0_i32 = arith.constant 0 : i32
    %c0_i32_0 = arith.constant 0 : i32
    return %arg0, %c0_i32 : i32, i32
  }
}

</mosaic_0001>

<bundles_post_ra>
// kernel: tpu_custom_call.1
= control target key start
LH: loop header
LB: loop body
LE: loop exit
PB: predicated region body
PF: predicated region fallthrough
CT: control target
= control target key end

     0   :  { %8 = vsyncpa [#allocation3], 0  ;;  %s1112_s0 = inlined_call_operand.hbm [shape: bf16[98,128], index: 0, kind: input, shape index: {}]   ;;  %s1113_s1 = inlined_call_operand.hbm [shape: bf16[128,128], index: 1, kind: input, shape index: {}]   ;;  %s1114_s2 = inlined_call_operand.vmem [shape: f32[1,128], index: 2, kind: input, shape index: {}]   ;;  %s1115_s3 = inlined_call_operand.hbm [shape: bf16[98,128], index: 3, kind: output, shape index: {}]  }
   0x1   :  { %10 = vsyncpa [#allocation3 + $0x1], 0 }
   0x2   :  { %11 = vsyncpa [#allocation6], 0 }
   0x3   :  { %12 = vsyncpa [#allocation4], 0 }
   0x4   :  { %14 = vsyncpa [#allocation4 + $0x1], 0  ;;  %s887_s12 = smov 0   ;;  %s889_s13 = smov 0  }
   0x5   :  { %s891_s14 = smov 0   ;;  %s893_s15 = smov 0  }
   0x6 LB: > { %s908_s16 = sadd.s32 4294967295, %s856_s15   ;;  %s532_s17 = sadd.s32 4294967294, %s856_s15   ;;  %s856_s15 = sphi %s893_s15, %s1135_s15   ;;  %s852_s14 = sphi %s891_s14, %s1134_s14   ;;  %s848_s13 = sphi %s889_s13, %s1133_s13   ;;  %s844_s12 = sphi %s887_s12, %s1132_s12  }
   0x7   : > { %s912_s18 = sadd.s32 1, %s856_s15   ;;  %s27_s19 = sadd.s32 1, %s852_s14 }
   0x8   : > { %s24_s20 = ssub.s32 %s856_s15, %s912_s18  ;;  %p34_p0 = scmp.ne.s32.totalorder %s852_s14, %s848_s13 }
   0x9   : > { %p25_p1 = scmp.eq.s32.totalorder %s24_s20, 0  ;;  %p35_p2 = scmp.eq.s32.totalorder %s856_s15, 0 }
   0xa   : > { %p40_p3 = scmp.ne.s32.totalorder %s848_s13, %s844_s12  ;;  %p1116_p4 = scmp.eq.s32.totalorder %s908_s16, 0 }
   0xb   : > { %s924_s21 = scalar_select %p25_p1, %s852_s14, %s27_s19  }
   0xc   : > { %p926_p5 = por %p35_p2, %p34_p0  ;;  %p932_p6 = por %p1116_p4, %p40_p3 }
   0xd   : > { %p106_p7 = scmp.eq.s32.totalorder %s908_s16, 1  ;;  %p112_p8 = scmp.eq.s32.totalorder %s532_s17, 1 }
   0xe   : > { %s1119_s22 = scalar_select %p926_p5, 1, 0 }
   0xf   : > { %s1120_s23 = scalar_select %p932_p6, 1, 0 }
  0x10   : > { %p533_p9 = scmp.ge.s32.totalorder %s856_s15, 1  ;;  %p119_p10 = scmp.lt.s32.totalorder %s856_s15, 3 }
  0x11   : > { %p939_p11 = por %p106_p7, %p34_p0  ;;  %p943_p12 = por %p112_p8, %p40_p3 }
  0x12   : > { %p947_p13 = pnand %p533_p9, %p119_p10  ;;  %s858_s27 = smov [#allocation5]  }
  0x13   : > { %s1121_s24 = scalar_select %p939_p11, 1, 0 }
  0x14   : > { %s1122_s25 = scalar_select %p943_p12, 1, 0 }
  0x15   : > { %s1123_s26 = scalar_select %p947_p13, 1, 0 }
  0x16   : > { %p668_p1 = pneg %p947_p13  ;;  %s131_s28 = sshll.u32 %s858_s27, 4  ;;  %s132_s28 = int_to_ptr.vmem [resolvable:$true] %s131_s28 }
  0x17   : > { %s730_s5 = scalar_lea.hbm %s1113_s1, 1024 }
  0x18   : > { %p955_p2 = pnand %p668_p1, %p1116_p4  ;;  %p731_p0 = scmp.ne.s32.totalorder %s1113_s1, %s730_s5 }
  0x19   : > { %p737_p9 = scmp.lt.u32.totalorder %s730_s5, %s1113_s1 }
  0x1a   : > { %p732_p3 = pneg %p955_p2 }
  0x1c   : > { %p733_p7 = pnand %p732_p3, %p731_p0 }
  0x1e   : > { %p734_p8 = pneg %p733_p7 }
  0x20   : > { %p739_p10 = pnand %p737_p9, %p734_p8 }
  0x22   : > { %742 = shalt.err (!%p739_p10)
}
  0x23   : > { %s743_s10 = scalar_lea.vmem %s132_s28, 1024  ;;  %p751_p11 = scmp.lt.s32.totalorder %s132_s28, %s132_s28 }
  0x24   : > { %p744_p1 = scmp.ne.s32.totalorder %s132_s28, %s743_s10  ;;  %p752_p6 = scmp.lt.s32.totalorder %s743_s10, %s743_s10 }
  0x26   : > { %p746_p4 = pnand %p744_p1, %p732_p3  ;;  %p753_p13 = por %p752_p6, %p751_p11 }
  0x28   : > { %p747_p12 = pneg %p746_p4 }
  0x2a   : > { %p754_p5 = pnand %p753_p13, %p747_p12 }
  0x2c   : > { %757 = shalt.err (!%p754_p5)
}
  0x2d   : > { %s859_s11 = smov 64   ;;  %s860_s17 = smov 4  }
  0x2e   : > { %671 = dma.hbm_to_vmem [thread:$0]  (!%p955_p2), %s1113_s1, 1024, %s132_s28, [#allocation6], %s859_s11, %s859_s11, %s860_s17  }
  0x2f   : > { %p535_p0 = scmp.ge.s32.totalorder %s856_s15, 2 }
  0x30   : > { %p1125_p4 = scmp.ne.s32.totalorder (!%p535_p0), %s1119_s22, 0 }
  0x31   : > { %144 = sbr.rel (%p535_p0) target bundleno = 91 (0x5b), region = 24 }
  0x38   : > { %147 = sbr.rel (!%p1125_p4) target bundleno = 91 (0x5b), region = 28  ;;  %s148_s27 = sand.u32 (%p1125_p4), 1, %s852_s14  }
  0x39   : > { %s537_s30 = sshll.u32 (%p1125_p4), %s856_s15, 3  ;;  %s536_s4 = sshll.u32 (%p1125_p4), %s148_s27, 5 }
  0x3a   : > { %s154_s5 = ssub.s32 (%p1125_p4), 13, %s537_s30  ;;  %s985_s6 = scalar_lea.sflag (%p1125_p4), [#allocation3], %s148_s27 }
  0x3b   : > { %p155_p5 = scmp.lt.s32.totalorder (%p1125_p4), %s154_s5, 8  ;;  %s152_s7 = scalar_lea.vmem (%p1125_p4), [#allocation2], %s536_s4 }
  0x3f   : > { %s1137_s5 = smov (!%p155_p5, %s154_s5), 8 }
  0x40   : > { %s982_s29 = sshll.u32 %s1137_s5, 6 }
  0x41   : > { %s159_s28 = ssub.s32 512, %s982_s29 }
  0x42   : > { %160 = vsyncadd %s985_s6, %s159_s28  ;;  %p539_p6 = scmp.ne.s32.totalorder %s982_s29, 0  ;;  %s577_s22 = sshll.u32 %s856_s15, 9 }
  0x43   : > { %s993_s10 = scalar_lea.hbm %s1112_s0, %s577_s22  ;;  %s165_s11 = sshll.u32 %s152_s7, 4  ;;  %s995_s11 = int_to_ptr.vmem [resolvable:$true] %s165_s11 }
  0x44   : > { %s758_s17 = scalar_lea.hbm %s993_s10, %s982_s29  ;;  %s762_s27 = scalar_lea.hbm %s1112_s0, 832 }
  0x45   : > { %p759_p11 = scmp.ne.s32.totalorder %s993_s10, %s758_s17  ;;  %p763_p2 = scmp.lt.u32.totalorder %s993_s10, %s1112_s0 }
  0x46   : > { %p764_p3 = scmp.lt.u32.totalorder %s762_s27, %s758_s17  ;;  %p766_p8 = scmp.lt.u32.totalorder %s758_s17, %s993_s10 }
  0x47   : > { %p760_p12 = pnand %p759_p11, %p539_p6 }
  0x48   : > { %p765_p7 = por %p764_p3, %p763_p2 }
  0x49   : > { %p761_p13 = pneg %p760_p12 }
  0x4a   : > { %p767_p9 = por %p766_p8, %p765_p7 }
  0x4c   : > { %p768_p10 = pnand %p767_p9, %p761_p13 }
  0x4e   : > { %771 = shalt.err (!%p768_p10)
}
  0x4f   : > { %s772_s5 = scalar_lea.vmem %s995_s11, %s982_s29  ;;  %s861_s28 = smov [#allocation2]  }
  0x50   : > { %p773_p1 = scmp.ne.s32.totalorder %s995_s11, %s772_s5  ;;  %s776_s7 = sshll.u32 %s861_s28, 4  ;;  %s777_s7 = int_to_ptr.vmem [resolvable:$false] %s776_s7 }
  0x51   : > { %s778_s22 = scalar_lea.vmem %s777_s7, 1024  ;;  %p779_p11 = scmp.lt.s32.totalorder %s995_s11, %s777_s7 }
  0x52   : > { %p774_p4 = pnand %p773_p1, %p539_p6  ;;  %p780_p12 = scmp.lt.s32.totalorder %s778_s22, %s772_s5 }
  0x54   : > { %p775_p5 = pneg %p774_p4  ;;  %p781_p2 = por %p780_p12, %p779_p11 }
  0x56   : > { %p782_p3 = pnand %p781_p2, %p775_p5 }
  0x58   : > { %785 = shalt.err (!%p782_p3)
}
  0x59   : > { %s862_s8 = smov 64   ;;  %s863_s9 = smov 4  }
  0x5a   : > { %171 = dma.hbm_to_vmem [thread:$0]  (%p539_p6), %s993_s10, %s982_s29, %s995_s11, %s985_s6, %s862_s8, %s862_s8, %s863_s9  }
  0x5b PF: > { %p1126_p13 = scmp.ne.s32.totalorder %s1123_s26, 0 }
  0x5c   : > { %s1025_s17 = sand.u32 (!%p1126_p13), 1, %s848_s13   ;;  %p1127_p7 = scmp.ne.s32.totalorder (!%p1126_p13), %s1120_s23, 0 }
  0x5d   : > { %177 = sbr.rel (%p1126_p13) target bundleno = 417 (0x1a1), region = 32  ;;  %s544_s19 = sshll.u32 (!%p1126_p13), %s1025_s17, 5 }
  0x5e   : > { %s180_s20 = scalar_lea.sflag (!%p1126_p13), [#allocation3], %s1025_s17  ;;  %s1031_s27 = scalar_lea.vmem (!%p1126_p13), [#allocation2], %s544_s19 }
  0x64   : > { %831 = dma.done.wait (%p1127_p7), %s180_s20, 512  }
  0x65   : > { %833 = vsyncadd (%p1127_p7), %s180_s20, 4294966784  ;;  %p1128_p6 = scmp.eq.s32.totalorder %s908_s16, 0 }
  0x67   : > { %835 = dma.done.wait (%p1128_p6), [#allocation6], 1024   ;;  %p1129_p8 = pmov %p1128_p6 }
  0x68   : > { %v718_v0 = vld [vmem:[#allocation5] sm:$0xff]   ;;  %v719_v1 = vld [vmem:[#allocation5 + $0x8] sm:$0xff]   ;;  %v720_v2 = vld [vmem:[#allocation5 + $0x10] sm:$0xff]   ;;  %s209_s29 = scalar_lea.vmem [#allocation7], %s544_s19  ;;  %s430_s6 = scalar_lea.sflag [#allocation4], %s1025_s17 }
  0x69   : > { %837 = vsyncadd (%p1129_p8), [#allocation6], 4294966272  ;;  %622 = vmatprep.subr.bf16.mxu0 %v718_v0  ;;  %646 = vmatprep.subr.bf16.mxu1 %v718_v0  ;;  %v726_v3 = vld [vmem:[%s1031_s27] sm:$0xff]   ;;  %v727_v4 = vld [vmem:[%s1031_s27 + $0x10] sm:$0xff]   ;;  %p1130_p9 = scmp.ne.s32.totalorder %s1121_s24, 0 }
  0x6a   : > { %623 = vmatpush3.bf16.xpose.msra.mxu0 %v718_v0  ;;  %654 = vmatpush3.bf16.xpose.msra.mxu1 %v718_v0  ;;  %v721_v5 = vld [vmem:[#allocation5 + $0x18] sm:$0xff]   ;;  %v722_v6 = vld [vmem:[#allocation5 + $0x20] sm:$0xff]   ;;  %v723_v7 = vld [vmem:[#allocation5 + $0x28] sm:$0xff]   ;;  %s569_s10 = sshll.u32 (%p1130_p9), %s908_s16, 3 }
  0x6b   : > { %624 = vmatprep.subr.bf16.mxu0 %v719_v1  ;;  %647 = vmatprep.subr.bf16.mxu1 %v719_v1  ;;  %v724_v8 = vld [vmem:[#allocation5 + $0x30] sm:$0xff]   ;;  %v725_v9 = vld [vmem:[#allocation5 + $0x38] sm:$0xff]   ;;  %v728_v10 = vld [vmem:[%s1031_s27 + $0x8] sm:$0xff]   ;;  %s438_s11 = ssub.s32 (%p1130_p9), 13, %s569_s10 }
  0x6c   : > { %638 = vmatprep.mubr.bf16.mxu0 %v726_v3  ;;  %642 = vmatprep.mubr.bf16.mxu1 %v727_v4  ;;  %v729_v11 = vld [vmem:[%s1031_s27 + $0x18] sm:$0xff]   ;;  %v547_v13 = vld [vmem:[%s1114_s2] ss:$0 sm:$0xff]  ;;  %p439_p10 = scmp.lt.s32.totalorder (%p1130_p9), %s438_s11, 8 }
  0x72   : > { %625 = vmatpush3.bf16.xpose.msra.mxu0 %v719_v1  ;;  %655 = vmatpush3.bf16.xpose.msra.mxu1 %v719_v1 }
  0x73   : > { %626 = vmatprep.subr.bf16.mxu0 %v720_v2  ;;  %648 = vmatprep.subr.bf16.mxu1 %v720_v2 }
  0x7a   : > { %627 = vmatpush3.bf16.xpose.msra.mxu0 %v720_v2  ;;  %656 = vmatpush3.bf16.xpose.msra.mxu1 %v720_v2 }
  0x7b   : > { %628 = vmatprep.subr.bf16.mxu0 %v721_v5  ;;  %649 = vmatprep.subr.bf16.mxu1 %v721_v5 }
  0x82   : > { %629 = vmatpush3.bf16.xpose.msra.mxu0 %v721_v5  ;;  %657 = vmatpush3.bf16.xpose.msra.mxu1 %v721_v5 }
  0x83   : > { %630 = vmatprep.subr.bf16.mxu0 %v722_v6  ;;  %650 = vmatprep.subr.bf16.mxu1 %v722_v6 }
  0x8a   : > { %631 = vmatpush3.bf16.xpose.msra.mxu0 %v722_v6  ;;  %658 = vmatpush3.bf16.xpose.msra.mxu1 %v722_v6 }
  0x8b   : > { %632 = vmatprep.subr.bf16.mxu0 %v723_v7  ;;  %651 = vmatprep.subr.bf16.mxu1 %v723_v7 }
  0x92   : > { %633 = vmatpush3.bf16.xpose.msra.mxu0 %v723_v7  ;;  %659 = vmatpush3.bf16.xpose.msra.mxu1 %v723_v7 }
  0x93   : > { %634 = vmatprep.subr.bf16.mxu0 %v724_v8  ;;  %652 = vmatprep.subr.bf16.mxu1 %v724_v8 }
  0x9a   : > { %635 = vmatpush3.bf16.xpose.msra.mxu0 %v724_v8  ;;  %660 = vmatpush3.bf16.xpose.msra.mxu1 %v724_v8 }
  0x9b   : > { %636 = vmatprep.subr.bf16.mxu0 %v725_v9  ;;  %653 = vmatprep.subr.bf16.mxu1 %v725_v9 }
  0xa2   : > { %637 = vmatpush3.bf16.xpose.msra.mxu0 %v725_v9  ;;  %661 = vmatpush3.bf16.xpose.msra.mxu1 %v725_v9 }
  0xa9   : > { %639 = vmatmul.mubr.bf16.vlgmr.msra.gmra.mrb[0].mxu0 %v728_v10  ;;  %643 = vmatmul.mubr.bf16.vlgmr.msra.gmra.mrb[0].mxu1 %v729_v11 }
 0x17c   : > { %v640_v12 = vpop.f32.mrb[0].mxu0  ;;  %v644_v14 = vpop.f32.mrb[0].mxu1 }
 0x17d   : > { %v358_v15 = vpop.f32.mrb[1].mxu0  ;;  %v374_v16 = vpop.f32.mrb[1].mxu1  ;;  %v367_v19 = vadd.f32 %v640_v12, %v547_v13  ;;  %v383_v20 = vadd.f32 %v644_v14, %v547_v13 }
 0x17e   : > { %v641_v17 = vpop.f32.mrb[2].mxu0  ;;  %v645_v18 = vpop.f32.mrb[2].mxu1  ;;  %v359_v25 = vadd.f32 %v547_v13, %v358_v15  ;;  %v375_v26 = vadd.f32 %v547_v13, %v374_v16  ;;  %436 = sbr.rel (!%p1130_p9) target bundleno = 417 (0x1a1), region = 44 }
 0x17f   : > { %v370_v21 = vadd.f32 %v641_v17, %v547_v13  ;;  %v386_v22 = vadd.f32 %v645_v18, %v547_v13  ;;  %v361_v23 = vpop.f32.mrb[3].mxu0  ;;  %v377_v24 = vpop.f32.mrb[3].mxu1 }
 0x180   : > { %v362_v27 = vadd.f32 %v547_v13, %v361_v23  ;;  %v378_v28 = vadd.f32 %v547_v13, %v377_v24 }
 0x181   : > { %v595_v29 = vpack.c.bf16 %v370_v21, %v367_v19  ;;  %v605_v30 = vpack.c.bf16 %v386_v22, %v383_v20 }
 0x182   : > { %v590_v31 = vpack.c.bf16 %v362_v27, %v359_v25  ;;  %v600_v32 = vpack.c.bf16 %v378_v28, %v375_v26 }
 0x183   : > { %607 = vst [vmem:[%s209_s29 + $0x8] sm:$0xff] %v595_v29   ;;  %609 = vst [vmem:[%s209_s29 + $0x18] sm:$0xff] %v605_v30  }
 0x184   : > { %591 = vst [vmem:[%s209_s29] sm:$0xff] %v590_v31   ;;  %608 = vst [vmem:[%s209_s29 + $0x10] sm:$0xff] %v600_v32  }
 0x185   : > { %s1139_s11 = smov (!%p439_p10, %s438_s11), 8 }
 0x186   : > { %s1054_s30 = sshll.u32 %s1139_s11, 6 }
 0x187   : > { %s443_s4 = ssub.s32 512, %s1054_s30 }
 0x188   : > { %444 = vsyncadd %s430_s6, %s443_s4  ;;  %p571_p1 = scmp.ne.s32.totalorder %s1054_s30, 0  ;;  %s586_s5 = sshll.u32 %s908_s16, 9 }
 0x189   : > { %s1064_s7 = scalar_lea.hbm %s1115_s3, %s586_s5  ;;  %s449_s22 = sshll.u32 %s209_s29, 4  ;;  %s1066_s22 = int_to_ptr.vmem [resolvable:$true] %s449_s22 }
 0x18a   : > { %s786_s8 = scalar_lea.vmem %s1066_s22, %s1054_s30  ;;  %s864_s9 = smov [#allocation7]  }
 0x18b   : > { %p787_p4 = scmp.ne.s32.totalorder %s1066_s22, %s786_s8  ;;  %s790_s19 = sshll.u32 %s864_s9, 4  ;;  %s791_s19 = int_to_ptr.vmem [resolvable:$false] %s790_s19 }
 0x18c   : > { %s792_s16 = scalar_lea.vmem %s791_s19, 1024  ;;  %p793_p12 = scmp.lt.s32.totalorder %s1066_s22, %s791_s19 }
 0x18d   : > { %p788_p5 = pnand %p787_p4, %p571_p1  ;;  %p794_p2 = scmp.lt.s32.totalorder %s792_s16, %s786_s8 }
 0x18f   : > { %p789_p11 = pneg %p788_p5  ;;  %p795_p3 = por %p794_p2, %p793_p12 }
 0x191   : > { %p796_p13 = pnand %p795_p3, %p789_p11 }
 0x193   : > { %799 = shalt.err (!%p796_p13)
}
 0x194   : > { %s800_s20 = scalar_lea.hbm %s1064_s7, %s1054_s30  ;;  %s804_s26 = scalar_lea.hbm %s1115_s3, 832 }
 0x195   : > { %p801_p7 = scmp.ne.s32.totalorder %s1064_s7, %s800_s20  ;;  %p805_p9 = scmp.lt.u32.totalorder %s1064_s7, %s1115_s3 }
 0x196   : > { %p806_p10 = scmp.lt.u32.totalorder %s804_s26, %s800_s20  ;;  %p808_p5 = scmp.lt.u32.totalorder %s800_s20, %s1064_s7 }
 0x197   : > { %p802_p6 = pnand %p801_p7, %p571_p1 }
 0x198   : > { %p807_p4 = por %p806_p10, %p805_p9 }
 0x199   : > { %p803_p8 = pneg %p802_p6 }
 0x19a   : > { %p809_p11 = por %p808_p5, %p807_p4 }
 0x19c   : > { %p810_p12 = pnand %p809_p11, %p803_p8 }
 0x19e   : > { %813 = shalt.err (!%p810_p12)
}
 0x19f   : > { %s865_s11 = smov 64   ;;  %s866_s4 = smov 4  }
 0x1a0   : > { %455 = dma.vmem_to_hbm [thread:$0]  (%p571_p1), %s1066_s22, %s1054_s30, %s1064_s7, %s430_s6, %s865_s11, %s865_s11, %s866_s4  }
 0x1a1 PF: > { %s464_s5 = sand.u32 1, %s844_s12   ;;  %p1131_p2 = scmp.ne.s32.totalorder %s1122_s25, 0 }
 0x1a2   : > { %s465_s24 = scalar_lea.sflag [#allocation4], %s464_s5 }
 0x1a3   : > { %p673_p3 = pnand %p535_p0, %p1131_p2 }
 0x1a5   : > { %839 = dma.done.wait (!%p673_p3), %s465_s24, 512  }
 0x1a6   : > { %841 = vsyncadd (!%p673_p3), %s465_s24, 4294966784  ;;  %p17_p13 = scmp.ge.s32.totalorder %s912_s18, 4   ;;  %s1132_s12 = smov %s848_s13 }
 0x1a7   : > { %s1133_s13 = smov %s852_s14  ;;  %s1134_s14 = smov %s924_s21 }
 0x1a8   : > { %s1135_s15 = smov %s912_s18  ;;  %19 = sbr.rel (!%p17_p13) target bundleno = 6 (0x6), region = 81 }
 0x1af   :  { %470 = vsyncpa [#allocation3], 1 }
 0x1b0   :  { %472 = vsyncpa [#allocation3 + $0x1], 1 }
 0x1b1   :  { %473 = vsyncpa [#allocation6], 1 }
 0x1b2   :  { %474 = vsyncpa [#allocation4], 1 }
 0x1b3   :  { %476 = vsyncpa [#allocation4 + $0x1], 1 }

</bundles_post_ra>
